<compile_context>
chip_gen: v6e
topology: v6e:2x2x1
jax: 0.10.0
libtpu: 0.0.40
codegen_flags: <defaults>
</compile_context>

<pallas_src>
import jax
import jax.numpy as jnp
from jax.experimental import pallas as pl
from jax.experimental.pallas import tpu as pltpu


# ----------------------------- kernel -----------------------------

def _h_swish_kernel(x_ref, o_ref):
    x = x_ref[...].astype(jnp.float32)
    # h_swish(x) = x * relu6(x + 3) / 6
    y = x * jnp.clip(x + 3.0, 0.0, 6.0) * (1.0 / 6.0)
    o_ref[...] = y.astype(o_ref.dtype)


# ----------------------------- tuning helpers -----------------------------

def _chip_defaults():
    """(target_block_bytes, vmem_limit_bytes) per TPU generation (best effort)."""
    try:
        kind = jax.devices()[0].device_kind.lower()
    except Exception:  # detection failure -> conservative defaults
        return 4 << 20, 48 << 20
    if "v7" in kind:
        # ~3.2 TB/s HBM but only 64 MiB VMEM/TC: ~2x bigger blocks, pipeline
        # footprint (2 bufs x (in + out) x block) stays well under ~48 MiB.
        return 8 << 20, 48 << 20
    # v5e/v6e: 128 MiB physical VMEM.  4 MiB blocks x 2 bufs x (in+out) = 16 MiB
    # would hit v5e's 16 MiB default scoped limit, so raise it explicitly.
    return 4 << 20, 64 << 20


def _round_up(v, m):
    return -(-v // m) * m


def _pick_tiles(extent, granule, budget_granules):
    """Block length along the tiled axis (in elements).

    The result is a multiple of `granule` (or equal to the full extent for
    tiny arrays), fits the VMEM byte budget, and is chosen so the grid has at
    least 2 (and preferably an even number of) steps whenever the array is
    large enough -- keeps both v7x TensorCores fed via the "parallel" axis.
    """
    budget = max(granule, budget_granules * granule)
    if extent < 2 * granule:
        return min(extent, budget)          # single (full-extent) block is allowed
    block = min(budget, extent)
    steps = -(-extent // block)
    if steps < 2:
        steps = 2
    if steps % 2:
        steps += 1                          # best-effort even grid for megacore
    return min(block, _round_up(-(-extent // steps), granule))


# ----------------------------- wrapper -----------------------------

def h_swish(x, *, target_block_bytes=None, vmem_limit_bytes=None):
    """Elementwise h_swish over an arbitrarily-shaped array via one Pallas kernel."""
    orig_shape = x.shape
    dtype = x.dtype
    itemsize = jnp.dtype(dtype).itemsize
    total = x.size
    if total == 0:
        return x

    tbb, vlim = _chip_defaults()
    if target_block_bytes is None:
        target_block_bytes = tbb
    if vmem_limit_bytes is None:
        vmem_limit_bytes = vlim

    # Packed-sublane multiple for the dtype (8 for 4-byte, 16 for 2-byte, ...).
    sub = {4: 8, 2: 16, 1: 32}.get(itemsize, 8)

    xf = x.reshape(-1)                      # contiguous flatten: free, no copy

    if total % 128 == 0:
        # Aligned path: lane-dense (rows, cols) view with cols | total,
        # tiled along rows in `sub`-multiples (exact or masked edge block).
        for c in (4096, 2048, 1024, 512, 256, 128):
            if total % c == 0:
                cols = c
                break
        rows = total // cols
        budget_granules = max(1, target_block_bytes // (cols * itemsize * sub))
        block_rows = _pick_tiles(rows, sub, budget_granules)
        x2 = xf.reshape(rows, cols)
        block_shape = (block_rows, cols)
        grid = (pl.cdiv(rows, block_rows),)
        index_map = lambda i: (i, 0)
    else:
        # Odd element count: no pad / slice / concat HBM round trips.
        # View as (r, total // r) with r the largest power-of-two divisor
        # (capped at the sublane pack); tile the lane axis in 128-multiples
        # and let Pallas mask the single partial edge block.
        r = sub
        while r > 1 and total % r:
            r //= 2
        cols = total // r
        x2 = xf.reshape(r, cols)
        if cols < 128:
            block_cols = cols               # full-extent tiny block
        else:
            budget_granules = max(1, target_block_bytes // (r * 128 * itemsize))
            block_cols = _pick_tiles(cols, 128, budget_granules)
        block_shape = (r, block_cols)
        grid = (pl.cdiv(cols, block_cols),)
        index_map = lambda i: (0, i)

    cost = pl.CostEstimate(
        flops=5 * total,
        transcendentals=0,
        bytes_accessed=2 * total * itemsize,
    )

    out = pl.pallas_call(
        _h_swish_kernel,
        out_shape=jax.ShapeDtypeStruct(x2.shape, dtype),
        grid=grid,
        in_specs=[pl.BlockSpec(block_shape, index_map)],
        out_specs=pl.BlockSpec(block_shape, index_map),
        compiler_params=pltpu.CompilerParams(
            dimension_semantics=("parallel",),
            vmem_limit_bytes=vmem_limit_bytes,
        ),
        cost_estimate=cost,
    )(x2)

    return out.reshape(orig_shape)


def _h_swish_ref(x):
    xf = x.astype(jnp.float32)
    return (xf * jnp.clip(xf + 3.0, 0.0, 6.0) / 6.0).astype(x.dtype)


# ----------------------------- test -----------------------------

if __name__ == "__main__":
    key = jax.random.PRNGKey(0)
    k1, k2, k3 = jax.random.split(key, 3)

    fwd = jax.jit(h_swish)

    # Main case: NCHW tensor (PyTorch convention), 128-aligned element count.
    x = jax.random.normal(k1, (2, 4, 16, 16), jnp.float32)
    y = fwd(x)
    jax.block_until_ready(y)
    assert y.shape == x.shape and y.dtype == x.dtype
    assert jnp.allclose(y, _h_swish_ref(x), atol=1e-6, rtol=1e-6)

    # Odd element count: exercises the copy-free masked-edge path.
    x2 = jax.random.normal(k2, (3, 5, 17, 19), jnp.float32)
    y2 = fwd(x2)
    jax.block_until_ready(y2)
    assert y2.shape == x2.shape and y2.dtype == x2.dtype
    assert jnp.allclose(y2, _h_swish_ref(x2), atol=1e-6, rtol=1e-6)

    # Narrow dtype: exercises the packed-sublane (16-row) granularity.
    x3 = jax.random.normal(k3, (2, 8, 16, 16), jnp.float32).astype(jnp.bfloat16)
    y3 = fwd(x3)
    jax.block_until_ready(y3)
    assert y3.shape == x3.shape and y3.dtype == x3.dtype
    assert jnp.allclose(y3.astype(jnp.float32), _h_swish_ref(x3).astype(jnp.float32),
                        atol=1e-2, rtol=1e-2)

    print("KERNEL_OK")
</pallas_src>

<mosaic_0001>
module attributes {stable_mosaic.version = 11 : i64} {
  func.func @_h_swish_kernel(%arg0: i32, %arg1: memref<1x2048xf32, #tpu.memory_space<vmem>>, %arg2: memref<1x2048xf32, #tpu.memory_space<vmem>>) attributes {dimension_semantics = [#tpu.dimension_semantics<parallel>], iteration_bounds = array<i64: 1>, scalar_prefetch = 0 : i64, scratch_operands = 0 : i64, tpu.core_type = #tpu.core_type<tc>, window_params = [{transform_indices = @transform_0, window_bounds = array<i64: 1, 2048>}, {transform_indices = @transform_1, window_bounds = array<i64: 1, 2048>}]} {
    %c0 = arith.constant 0 : index
    %c0_0 = arith.constant 0 : index
    %0 = vector.load %arg1[%c0, %c0_0] : memref<1x2048xf32, #tpu.memory_space<vmem>>, vector<1x2048xf32>
    %cst = arith.constant 3.000000e+00 : f32
    %1 = vector.broadcast %cst : f32 to vector<1x2048xf32>
    %2 = arith.addf %0, %1 : vector<1x2048xf32>
    %cst_1 = arith.constant 0.000000e+00 : f32
    %cst_2 = arith.constant 6.000000e+00 : f32
    %3 = vector.broadcast %cst_1 : f32 to vector<1x2048xf32>
    %4 = arith.maximumf %3, %2 : vector<1x2048xf32>
    %5 = vector.broadcast %cst_2 : f32 to vector<1x2048xf32>
    %6 = arith.minimumf %5, %4 : vector<1x2048xf32>
    %7 = arith.mulf %0, %6 : vector<1x2048xf32>
    %cst_3 = arith.constant 0.166666672 : f32
    %8 = vector.broadcast %cst_3 : f32 to vector<1x2048xf32>
    %9 = arith.mulf %7, %8 : vector<1x2048xf32>
    %c0_4 = arith.constant 0 : index
    %c0_5 = arith.constant 0 : index
    %10 = vector.load %arg2[%c0_4, %c0_5] : memref<1x2048xf32, #tpu.memory_space<vmem>>, vector<1x2048xf32>
    tpu.vector_store %arg2[%c0_4, %c0_5], %9 {strides = array<i32>} : memref<1x2048xf32, #tpu.memory_space<vmem>>, vector<1x2048xf32>,
    return
  }
  func.func @transform_0(%arg0: i32) -> (i32, i32) {
    %c0_i32 = arith.constant 0 : i32
    %c0_i32_0 = arith.constant 0 : i32
    return %arg0, %c0_i32 : i32, i32
  }
  func.func @transform_1(%arg0: i32) -> (i32, i32) {
    %c0_i32 = arith.constant 0 : i32
    %c0_i32_0 = arith.constant 0 : i32
    return %arg0, %c0_i32 : i32, i32
  }
}

</mosaic_0001>

<bundles_post_ra>
// kernel: h_swish.1
= control target key start
LH: loop header
LB: loop body
LE: loop exit
PB: predicated region body
PF: predicated region fallthrough
CT: control target
= control target key end

     0   :  { %s48_s0 = inlined_call_operand.vmem [shape: f32[1,2048], index: 0, kind: input, shape index: {}]   ;;  %s49_s1 = inlined_call_operand.vmem [shape: f32[1,2048], index: 1, kind: output, shape index: {}]  }
   0x1   :  { %v8_v0 = vld [vmem:[%s48_s0] sm:$0xff]  ;;  %v9_v1 = vld [vmem:[%s48_s0 + $0x8] sm:$0xff] }
   0x2   :  { %v10_v2 = vadd.f32 3.0, %v8_v0  ;;  %v11_v3 = vadd.f32 3.0, %v9_v1 }
   0x4   :  { %v12_v4 = vmax.f32 %v10_v2, 0.0  ;;  %v13_v5 = vmax.f32 %v11_v3, 0.0 }
   0x6   :  { %v14_v6 = vmin.f32 %v12_v4, 6.0  ;;  %v15_v7 = vmin.f32 %v13_v5, 6.0 }
   0x8   :  { %v16_v8 = vmul.f32 %v14_v6, %v8_v0  ;;  %v17_v9 = vmul.f32 %v15_v7, %v9_v1 }
   0xa   :  { %v18_v10 = vmul.f32 0.16666667, %v16_v8  ;;  %v19_v11 = vmul.f32 0.16666667, %v17_v9 }
   0xc   :  { %20 = vst [vmem:[%s49_s1] sm:$0xff] %v18_v10  ;;  %21 = vst [vmem:[%s49_s1 + $0x8] sm:$0xff] %v19_v11 }

</bundles_post_ra>
